<compile_context>
chip_gen: v7x
topology: tpu7x:2x2x1
jax: 0.10.0
libtpu: 0.0.40
codegen_flags: <defaults>
</compile_context>

<pallas_src>
from functools import partial

import jax
import jax.numpy as jnp
from jax.experimental import pallas as pl
from jax.experimental.pallas import tpu as pltpu

NEG_SLOPE = 0.01                       # torch.nn.LeakyReLU default
_INV_LN10 = 0.4342944819032518         # 1 / ln(10)
_LANE = 128

# Packed parameter slab layout, (16, 128) float32:
#   W2 (8,16)  : rows 0:8,  cols  0:16   (MXU LHS, lane-aligned at 0)
#   W3 (4,8)   : rows 8:12, cols  0:8    (MXU LHS, lane-aligned at 0)
#   W1 (16,2)  : rows 0:16, cols 16:18   (MXU LHS, K=2)
#   W4^T (4,1) : rows 0:4,  col  18
#   b1 (16,1)  : rows 0:16, col  19
#   b2 (8,1)   : rows 0:8,  col  20
#   b3 (4,1)   : rows 0:4,  col  21
#   b4 (1,1)   : row  0,    col  22


def _leaky_relu(h):
    # mul + max instead of cmp + select (fewer VALU ops on the binding slot)
    return jnp.maximum(h, NEG_SLOPE * h)


def _round_up(n, m):
    return ((n + m - 1) // m) * m


def pair_approximator_kernel(wp_ref, x_ref, o_ref):
    """wp_ref: (16,128) packed params (resident); x_ref: (2, TB) batch tile
    (batch on lanes); o_ref: (1, TB) output tile (lane-dense stores)."""
    wp = wp_ref[...]                                      # (16, 128)
    x = x_ref[...]                                        # (2, TB)

    # Only reached when min(x) > 0 (lax.cond in the wrapper); pad lanes are
    # filled with 1.0, so log() is finite everywhere — no clamp needed.
    h0 = jnp.log(x) * jnp.float32(_INV_LN10)              # log10(x), (2, TB)

    # Layer 1: Linear(2,16) on the MXU (MXU slot has slack; relieves VALU).
    w1 = wp[0:16, 16:18]                                  # (16, 2)
    b1 = wp[0:16, 19:20]                                  # (16, 1)
    h1 = _leaky_relu(
        jnp.dot(w1, h0, preferred_element_type=jnp.float32) + b1)     # (16, TB)

    # Layer 2: Linear(16,8) on the MXU.
    w2 = wp[0:8, 0:16]                                    # (8, 16)
    b2 = wp[0:8, 20:21]                                   # (8, 1)
    h2 = _leaky_relu(
        jnp.dot(w2, h1, preferred_element_type=jnp.float32) + b2)     # (8, TB)

    # Layer 3: Linear(8,4) on the MXU.
    w3 = wp[8:12, 0:8]                                    # (4, 8)
    b3 = wp[0:4, 21:22]                                   # (4, 1)
    h3 = _leaky_relu(
        jnp.dot(w3, h2, preferred_element_type=jnp.float32) + b3)     # (4, TB)

    # Layer 4: Linear(4,1) as broadcast MAC + 4-row sublane reduce (XLU slot).
    w4t = wp[0:4, 18:19]                                  # (4, 1) == W4^T
    b4 = wp[0:1, 22:23]                                   # (1, 1)
    h4 = jnp.sum(w4t * h3, axis=0, keepdims=True) + b4    # (1, TB)

    o_ref[...] = jax.nn.sigmoid(h4)


def _pack_params(params):
    """Pack all weights/biases (torch layout: w (out,in), b (out,)) into one
    (16,128) f32 slab so they are DMA'd once and stay resident in VMEM."""
    wp = jnp.zeros((16, 128), jnp.float32)
    wp = wp.at[0:8, 0:16].set(params["w2"])        # (8, 16)
    wp = wp.at[8:12, 0:8].set(params["w3"])        # (4, 8)
    wp = wp.at[0:16, 16:18].set(params["w1"])      # (16, 2)
    wp = wp.at[0:4, 18].set(params["w4"][0])       # W4^T column
    wp = wp.at[0:16, 19].set(params["b1"])
    wp = wp.at[0:8, 20].set(params["b2"])
    wp = wp.at[0:4, 21].set(params["b3"])
    wp = wp.at[0, 22].set(params["b4"][0])
    return wp


def _choose_tiling(B, tile_cap):
    """Balanced lane tiles: pad B only to a multiple of 128, then split into
    n_steps equal tiles (>=2 steps when possible, for v7x megacore)."""
    Bp128 = _round_up(max(B, 1), _LANE)
    cap = max(_LANE, _round_up(min(int(tile_cap), Bp128), _LANE))
    n_steps = -(-Bp128 // cap)                     # ceil-div
    if Bp128 >= 2 * _LANE:
        n_steps = max(n_steps, 2)                  # >=2 parallel grid steps
    tb = _round_up(-(-Bp128 // n_steps), _LANE)    # balanced tile, mult of 128
    Bp = _round_up(Bp128, tb)                      # exact multiple of tb
    return tb, Bp


@partial(jax.jit, static_argnames=("tile_cap",))
def pair_approximator_forward(x, params, *, tile_cap=65536):
    """x: (B, 2) float32. Returns (B, 1) float32 matching the torch module.

    tile_cap: max batch-tile lane width. 64K lanes => ~8 MiB double-buffered
    VMEM (8-sublane padding counted), safe under the default scoped VMEM limit
    on v5e (16 MiB), v6e (32 MiB) and v7x (32 MiB of 64 MiB physical).
    """
    B = x.shape[0]
    tb, Bp = _choose_tiling(B, tile_cap)

    wpack = _pack_params(params)

    # Global gate hoisted out of the kernel (keeps torch.min-over-tensor
    # semantics even with a batch grid).
    gate = jnp.min(x) > 0

    # Lane-dense, batch-on-lanes layout: transpose to (2, B), pad lanes with
    # 1.0 (=> log(1)=0 in the pad region; padded outputs are sliced off).
    x_t = jnp.transpose(x)                                # (2, B)
    if Bp != B:
        x_t = jnp.pad(x_t, ((0, 0), (0, Bp - B)), constant_values=1.0)

    def _run_kernel(x_pad):
        return pl.pallas_call(
            pair_approximator_kernel,
            out_shape=jax.ShapeDtypeStruct((1, Bp), jnp.float32),
            grid_spec=pltpu.PrefetchScalarGridSpec(
                num_scalar_prefetch=0,
                grid=(Bp // tb,),
                in_specs=[
                    # packed params: constant index_map -> fetched once, resident
                    pl.BlockSpec((16, 128), lambda i: (0, 0)),
                    # batch tile of x, lane-dense, double-buffered by Pallas
                    pl.BlockSpec((2, tb), lambda i: (0, i)),
                ],
                out_specs=pl.BlockSpec((1, tb), lambda i: (0, i)),
            ),
            compiler_params=pltpu.CompilerParams(
                dimension_semantics=("parallel",),   # megacore sharding on v7x
            ),
        )(wpack, x_pad)

    def _zeros(_):
        return jnp.zeros((1, Bp), jnp.float32)

    # Short-circuit: when min(x) <= 0 we never stream x HBM->VMEM at all.
    out = jax.lax.cond(gate, _run_kernel, _zeros, x_t)

    return jnp.transpose(out[:, :B])                      # (B, 1)


def init_params(key):
    """Deterministic init mirroring nn.Linear (torch layout: w (out,in), b (out,))."""
    sizes = [(2, 16), (16, 8), (8, 4), (4, 1)]
    params = {}
    for i, (fan_in, fan_out) in enumerate(sizes, start=1):
        key, kw, kb = jax.random.split(key, 3)
        bound = 1.0 / (float(fan_in) ** 0.5)
        params[f"w{i}"] = jax.random.uniform(
            kw, (fan_out, fan_in), jnp.float32, -bound, bound)
        params[f"b{i}"] = jax.random.uniform(
            kb, (fan_out,), jnp.float32, -bound, bound)
    return params


def _ref_leaky(h):
    return jnp.where(h > 0, h, NEG_SLOPE * h)


def reference_forward(x, params):
    """Pure-JAX reference of the PyTorch forward for validation (eager)."""
    if jnp.min(x) > 0:
        h = jnp.log10(x)
        h = _ref_leaky(h @ params["w1"].T + params["b1"])
        h = _ref_leaky(h @ params["w2"].T + params["b2"])
        h = _ref_leaky(h @ params["w3"].T + params["b3"])
        h = h @ params["w4"].T + params["b4"]
        return jax.nn.sigmoid(h)
    return jnp.zeros((x.shape[0], 1), jnp.float32)


if __name__ == "__main__":
    key = jax.random.PRNGKey(0)
    kp, kx = jax.random.split(key)
    params = init_params(kp)

    B = 8
    # strictly positive inputs -> takes the MLP branch
    x_pos = jax.random.uniform(kx, (B, 2), jnp.float32, 0.1, 5.0)
    # one non-positive entry -> takes the zeros branch
    x_neg = x_pos.at[3, 1].set(-0.5)

    out_pos = jax.block_until_ready(pair_approximator_forward(x_pos, params))
    out_neg = jax.block_until_ready(pair_approximator_forward(x_neg, params))
    ref_pos = reference_forward(x_pos, params)
    ref_neg = reference_forward(x_neg, params)

    assert out_pos.shape == (B, 1) and out_neg.shape == (B, 1)
    assert jnp.allclose(out_pos, ref_pos, atol=1e-5, rtol=1e-5)
    assert jnp.allclose(out_neg, ref_neg, atol=1e-5, rtol=1e-5)

    # Exercise the multi-step batch grid (>=2 parallel steps) + lane padding.
    B2 = 300
    x2 = jax.random.uniform(jax.random.PRNGKey(1), (B2, 2), jnp.float32, 0.05, 10.0)
    out2 = jax.block_until_ready(pair_approximator_forward(x2, params))
    ref2 = reference_forward(x2, params)
    assert out2.shape == (B2, 1)
    assert jnp.allclose(out2, ref2, atol=1e-5, rtol=1e-5)

    print("KERNEL_OK")
</pallas_src>

<mosaic_0001>
module attributes {stable_mosaic.version = 11 : i64} {
  func.func @pair_approximator_kernel(%arg0: i32, %arg1: memref<16x128xf32, #tpu.memory_space<vmem>>, %arg2: memref<2x128xf32, #tpu.memory_space<vmem>>, %arg3: memref<1x128xf32, #tpu.memory_space<vmem>>) attributes {dimension_semantics = [#tpu.dimension_semantics<parallel>], iteration_bounds = array<i64: 1>, scalar_prefetch = 0 : i64, scratch_operands = 0 : i64, tpu.core_type = #tpu.core_type<tc>, window_params = [{pipeline_mode = #tpu.pipeline_mode<synchronous>, transform_indices = @transform_0, window_bounds = array<i64: 16, 128>}, {transform_indices = @transform_1, window_bounds = array<i64: 2, 128>}, {transform_indices = @transform_2, window_bounds = array<i64: 1, 128>}]} {
    %c0 = arith.constant 0 : index
    %c0_0 = arith.constant 0 : index
    %0 = vector.load %arg1[%c0, %c0_0] : memref<16x128xf32, #tpu.memory_space<vmem>>, vector<16x128xf32>
    %c0_1 = arith.constant 0 : index
    %c0_2 = arith.constant 0 : index
    %1 = vector.load %arg2[%c0_1, %c0_2] : memref<2x128xf32, #tpu.memory_space<vmem>>, vector<2x128xf32>
    %2 = math.log %1 : vector<2x128xf32>
    %cst = arith.constant 0.434294492 : f32
    %3 = vector.broadcast %cst : f32 to vector<2x128xf32>
    %4 = arith.mulf %2, %3 : vector<2x128xf32>
    %5 = vector.extract_strided_slice %0 {offsets = [0, 16], sizes = [16, 2], strides = [1, 1]} : vector<16x128xf32> to vector<16x2xf32>
    %6 = vector.extract_strided_slice %0 {offsets = [0, 19], sizes = [16, 1], strides = [1, 1]} : vector<16x128xf32> to vector<16x1xf32>
    %cst_3 = arith.constant dense<0.000000e+00> : vector<16x128xf32>
    %7 = tpu.matmul %5, %4, %cst_3 {dimension_numbers = #tpu.dot_dimension_numbers<[1], [0], [0], [1], [0, 0, 1, 1], [], []>} : vector<16x2xf32>, vector<2x128xf32>, vector<16x128xf32> -> vector<16x128xf32>
    %8 = vector.broadcast %6 : vector<16x1xf32> to vector<16x128xf32>
    %9 = arith.addf %7, %8 : vector<16x128xf32>
    %cst_4 = arith.constant 0.00999999977 : f32
    %10 = vector.broadcast %cst_4 : f32 to vector<16x128xf32>
    %11 = arith.mulf %10, %9 : vector<16x128xf32>
    %12 = arith.maximumf %9, %11 : vector<16x128xf32>
    %13 = vector.extract_strided_slice %0 {offsets = [0, 0], sizes = [8, 16], strides = [1, 1]} : vector<16x128xf32> to vector<8x16xf32>
    %14 = vector.extract_strided_slice %0 {offsets = [0, 20], sizes = [8, 1], strides = [1, 1]} : vector<16x128xf32> to vector<8x1xf32>
    %cst_5 = arith.constant dense<0.000000e+00> : vector<8x128xf32>
    %15 = tpu.matmul %13, %12, %cst_5 {dimension_numbers = #tpu.dot_dimension_numbers<[1], [0], [0], [1], [0, 0, 1, 1], [], []>} : vector<8x16xf32>, vector<16x128xf32>, vector<8x128xf32> -> vector<8x128xf32>
    %16 = vector.broadcast %14 : vector<8x1xf32> to vector<8x128xf32>
    %17 = arith.addf %15, %16 : vector<8x128xf32>
    %cst_6 = arith.constant 0.00999999977 : f32
    %18 = vector.broadcast %cst_6 : f32 to vector<8x128xf32>
    %19 = arith.mulf %18, %17 : vector<8x128xf32>
    %20 = arith.maximumf %17, %19 : vector<8x128xf32>
    %21 = vector.extract_strided_slice %0 {offsets = [8, 0], sizes = [4, 8], strides = [1, 1]} : vector<16x128xf32> to vector<4x8xf32>
    %22 = vector.extract_strided_slice %0 {offsets = [0, 21], sizes = [4, 1], strides = [1, 1]} : vector<16x128xf32> to vector<4x1xf32>
    %cst_7 = arith.constant dense<0.000000e+00> : vector<4x128xf32>
    %23 = tpu.matmul %21, %20, %cst_7 {dimension_numbers = #tpu.dot_dimension_numbers<[1], [0], [0], [1], [0, 0, 1, 1], [], []>} : vector<4x8xf32>, vector<8x128xf32>, vector<4x128xf32> -> vector<4x128xf32>
    %24 = vector.broadcast %22 : vector<4x1xf32> to vector<4x128xf32>
    %25 = arith.addf %23, %24 : vector<4x128xf32>
    %cst_8 = arith.constant 0.00999999977 : f32
    %26 = vector.broadcast %cst_8 : f32 to vector<4x128xf32>
    %27 = arith.mulf %26, %25 : vector<4x128xf32>
    %28 = arith.maximumf %25, %27 : vector<4x128xf32>
    %29 = vector.extract_strided_slice %0 {offsets = [0, 18], sizes = [4, 1], strides = [1, 1]} : vector<16x128xf32> to vector<4x1xf32>
    %30 = vector.extract_strided_slice %0 {offsets = [0, 22], sizes = [1, 1], strides = [1, 1]} : vector<16x128xf32> to vector<1x1xf32>
    %31 = vector.broadcast %29 : vector<4x1xf32> to vector<4x128xf32>
    %32 = arith.mulf %31, %28 : vector<4x128xf32>
    %cst_9 = arith.constant dense<0.000000e+00> : vector<128xf32>
    %33 = vector.multi_reduction <add>, %32, %cst_9 [0] : vector<4x128xf32> to vector<128xf32>
    %34 = vector.shape_cast %33 : vector<128xf32> to vector<1x128xf32>
    %35 = vector.broadcast %30 : vector<1x1xf32> to vector<1x128xf32>
    %36 = arith.addf %34, %35 : vector<1x128xf32>
    %37 = arith.negf %36 : vector<1x128xf32>
    %38 = math.exp %37 : vector<1x128xf32>
    %cst_10 = arith.constant 1.000000e+00 : f32
    %39 = vector.broadcast %cst_10 : f32 to vector<1x128xf32>
    %40 = arith.addf %39, %38 : vector<1x128xf32>
    %41 = arith.divf %39, %40 : vector<1x128xf32>
    %c0_11 = arith.constant 0 : index
    %c0_12 = arith.constant 0 : index
    %42 = vector.load %arg3[%c0_11, %c0_12] : memref<1x128xf32, #tpu.memory_space<vmem>>, vector<1x128xf32>
    tpu.vector_store %arg3[%c0_11, %c0_12], %41 {strides = array<i32>} : memref<1x128xf32, #tpu.memory_space<vmem>>, vector<1x128xf32>,
    return
  }
  func.func @transform_0(%arg0: i32) -> (i32, i32) {
    %c0_i32 = arith.constant 0 : i32
    %c0_i32_0 = arith.constant 0 : i32
    %c0_i32_1 = arith.constant 0 : i32
    return %c0_i32, %c0_i32_0 : i32, i32
  }
  func.func @transform_1(%arg0: i32) -> (i32, i32) {
    %c0_i32 = arith.constant 0 : i32
    %c0_i32_0 = arith.constant 0 : i32
    return %c0_i32, %arg0 : i32, i32
  }
  func.func @transform_2(%arg0: i32) -> (i32, i32) {
    %c0_i32 = arith.constant 0 : i32
    %c0_i32_0 = arith.constant 0 : i32
    return %c0_i32, %arg0 : i32, i32
  }
}

</mosaic_0001>

<bundles_post_ra>
// kernel: branch_1_fun.6
= control target key start
LH: loop header
LB: loop body
LE: loop exit
PB: predicated region body
PF: predicated region fallthrough
CT: control target
= control target key end

     0   :  { %v360_v2 = vmov 19   ;;  %s361_s13 = smov 112   ;;  %vm36_vm0 = vcmask 1041408   ;;  %vm31_vm1 = vcmask 15360   ;;  %v362_v9 = vmov 0.0|0.0   ;;  %s396_s0 = inlined_call_operand.vmem [shape: f32[16,128], index: 0, kind: input, shape index: {}]   ;;  %s397_s1 = inlined_call_operand.vmem [shape: f32[2,128], index: 1, kind: input, shape index: {}]   ;;  %s398_s2 = inlined_call_operand.vmem [shape: f32[1,128], index: 2, kind: output, shape index: {}]  }
   0x1   :  { %v11_v0 = vld [vmem:[%s396_s0] sm:$0xff]  ;;  %349 = vset.pattern.permute.xlu1 %v360_v2  ;;  %v12_v3 = vld [vmem:[%s396_s0 + $0x8] sm:$0xff]  ;;  %337 = vmatprep.subr.bf16.mxu1 %v362_v9  ;;  %vm363_vm2 = vmmov 0   ;;  %v364_v10 = vmov 0.0   ;;  %v365_v11 = vmov 20   ;;  %vm123_vm3 = vcmask 130048  }
   0x2   :  { %v13_v1 = vld [vmem:[%s397_s1] sm:$0x3]  ;;  %27 = vrot.lane.b32.xlu0 %v11_v0, %s361_s13  ;;  %19 = vperm.xlu1 %349, %v11_v0   ;;  %v366_v23 = vmov 21   ;;  %v367_v24 = vmov 22   ;;  %v368_v25 = vmov 18   ;;  %vm202_vm4 = vcmask 64512  }
   0x3   :  { %354 = vlog2.f32 %v13_v1  ;;  %329 = vmatprep.mubr.msk.f32.mxu1 %vm363_vm2, %v364_v10  ;;  %350 = vset.pattern.permute.xlu0 %v365_v11  ;;  %vm282_vm5 = vcmask 1043456  }
   0x6   :  { %29 = vrot.lane.b32.xlu0 %v12_v3, %s361_s13  ;;  %24 = vperm.xlu1 %349, %v12_v3  }
   0xa   :  { %120 = vperm.xlu0 %350, %v11_v0   ;;  %351 = vset.pattern.permute.xlu1 %v366_v23 }
   0xb   :  { %199 = vperm.xlu1 %351, %v11_v0  }
   0xd   :  { %v355_v4 = vpop.eup %354 }
   0xe   :  { %v15_v5 = vmul.f32 0.6931472, %v355_v4  ;;  %353 = vset.pattern.permute.xlu0 %v367_v24 }
   0xf   :  { %291 = vperm.xlu0 %353, %v11_v0   ;;  %352 = vset.pattern.permute.xlu1 %v368_v25 }
  0x10   :  { %v16_v6 = vmul.f32 0.4342945, %v15_v5  ;;  %278 = vperm.xlu1 %352, %v11_v0  }
  0x12   :  { %320 = vmatprep.subr.msk.mxu0 %vm36_vm0, %v16_v6 }
  0x13   :  { %321 = vmatpush3.msk.msra.mxu0 %vm36_vm0, %v16_v6 }
  0x14   :  { %332 = vmatprep.subr.mxu0 %v364_v10 }
  0x74   :  { %v28_v7 = vpop.permute.xlu0 %27 }
  0x75   :  { %322 = vmatprep.mubr.msk.f32.mxu0 %vm31_vm1, %v28_v7 }
  0x78   :  { %v30_v8 = vpop.permute.xlu0 %29 }
  0x79   :  { %323 = vmatmul.mubr.msk.f32.vlgmr.msra.gmra.mrb[0].mxu0 %vm31_vm1, %v30_v8 }
  0x7a   :  { %334 = vmatprep.mubr.msk.f32.mxu0 %vm363_vm2, %v364_v10 }
  0x81   :  { %v20_v12 = vpop.permute.xlu1 %19 }
  0x85   :  { %v25_v13 = vpop.permute.xlu1 %24 }
  0x89   :  { %v121_v26 = vpop.permute.xlu0 %120 }
  0x8a   :  { %v200_v32 = vpop.permute.xlu1 %199 }
  0x8e   :  { %v292_v46 = vpop.permute.xlu0 %291 }
  0x8f   :  { %v279_v37 = vpop.permute.xlu1 %278 }
 0x14c   :  { %v324_v14 = vpop.f32.mrb[0].mxu0 }
 0x14d   :  { %v112_v15 = vadd.f32 %v324_v14, %v25_v13  ;;  %v106_v16 = vpop.f32.mrb[1].mxu0 }
 0x14e   :  { %v107_v17 = vadd.f32 %v106_v16, %v20_v12 }
 0x14f   :  { %v116_v18 = vmul.f32 0.01, %v112_v15 }
 0x150   :  { %v115_v19 = vmul.f32 0.01, %v107_v17 }
 0x151   :  { %v118_v20 = vmax.f32 %v112_v15, %v116_v18 }
 0x152   :  { %v117_v21 = vmax.f32 %v107_v17, %v115_v19 }
 0x154   :  { %v338_v22 = vpack.c.bf16 %v118_v20, %v117_v21 }
 0x156   :  { %339 = vmatpush3.bf16.msra.mxu1 %v338_v22 }
 0x159   :  { %330 = vmatmul.mubr.msk.f32.vlgmr.msra.gmra.mrb[0].mxu1 %vm123_vm3, %v11_v0 }
 0x22c   :  { %v192_v27 = vpop.f32.mrb[0].mxu1 }
 0x22d   :  { %v193_v28 = vadd.f32 %v192_v27, %v121_v26  ;;  %v331_v29 = vpop.f32.mrb[1].mxu1 }
 0x22f   :  { %v196_v30 = vmul.f32 0.01, %v193_v28 }
 0x231   :  { %v197_v31 = vmax.f32 %v193_v28, %v196_v30 }
 0x233   :  { %333 = vmatpush3.msra.mxu0 %v197_v31 }
 0x234   :  { %335 = vmatmul.mubr.msk.f32.vlgmr.msra.gmra.mrb[2].mxu0 %vm202_vm4, %v12_v3 }
 0x307   :  { %v271_v33 = vpop.f32.mrb[2].mxu0 }
 0x308   :  { %v272_v34 = vadd.f32 %v271_v33, %v200_v32  ;;  %v336_v35 = vpop.f32.mrb[3].mxu0 }
 0x30a   :  { %v275_v36 = vmul.f32 0.01, %v272_v34 }
 0x30c   :  { %v276_v38 = vmax.f32 %v272_v34, %v275_v36 }
 0x30e   :  { %v281_v39 = vmul.f32 %v279_v37, %v276_v38 }
 0x310   :  { %v283_v40 = vsel %vm282_vm5, %v281_v39, 0.0 }
 0x311   :  { %v284_v41 = vrot.slane %v283_v40, 4 }
 0x313   :  { %v285_v42 = vadd.f32 %v284_v41, %v283_v40 }
 0x315   :  { %v286_v43 = vrot.slane %v285_v42, 2 }
 0x317   :  { %v287_v44 = vadd.f32 %v286_v43, %v285_v42 }
 0x319   :  { %v288_v45 = vrot.slane %v287_v44, 1 }
 0x31b   :  { %v289_v47 = vadd.f32 %v288_v45, %v287_v44 }
 0x31d   :  { %v294_v48 = vadd.f32 %v292_v46, %v289_v47 }
 0x31f   :  { %v311_v49 = vmul.f32 -1.442695, %v294_v48 }
 0x321   :  { %356 = vpow2.f32 %v311_v49 }
 0x32b   :  { %v357_v50 = vpop.eup %356 }
 0x32c   :  { %v298_v51 = vadd.f32 1.0, %v357_v50 }
 0x32e   :  { %358 = vrcp.f32 %v298_v51 }
 0x338   :  { %v359_v52 = vpop.eup %358 }
 0x339   :  { %301 = vst [vmem:[%s398_s2] sm:$0x1] %v359_v52 }

</bundles_post_ra>
